<compile_context>
chip_gen: v6e
topology: v6e:2x2x1
jax: 0.10.0
libtpu: 0.0.40
codegen_flags: <defaults>
</compile_context>

<pallas_src>
import functools

import jax
import jax.numpy as jnp
from jax import lax
from jax.experimental import pallas as pl
from jax.experimental.pallas import tpu as pltpu


DROPOUT_P = 0.5                       # torch.nn.Dropout(0.5)
_KEEP_SCALE = 1.0 / (1.0 - DROPOUT_P)


def _mix32(x):
    """Stateless xorshift-multiply mixer on int32 (lowbias32-style).

    Logical right shifts are emulated with arithmetic shift + mask so only
    plain int32 ops are needed (portable to Mosaic and the CPU interpreter;
    pltpu.prng_* is TPU-only)."""
    x = x ^ ((x >> 16) & 0xFFFF)
    x = x * jnp.int32(0x7FEB352D)
    x = x ^ ((x >> 15) & 0x1FFFF)
    x = x * jnp.int32(0x46CA68B7)
    x = x ^ ((x >> 16) & 0xFFFF)
    return x


def _attn_dropout_kernel(seed_ref, x1_ref, x2_ref, o_ref, *, apply_dropout):
    """Grid = (batch, q_tile).

    Blocks: x1_ref, x2_ref -> (1, S, D) (resident across q tiles of a batch),
            o_ref          -> (1, TQ, D)."""
    b = pl.program_id(0)
    qi = pl.program_id(1)

    S = x1_ref.shape[1]
    TQ = o_ref.shape[1]
    q_start = qi * TQ

    # ---- scores = (x1_tile / 8) @ x2^T : bf16 operands, f32 accumulation ----
    # Scale the small (TQ, D) operand instead of the (TQ, S) score matrix.
    q = (x1_ref[0, pl.ds(q_start, TQ), :] * (1.0 / 8.0)).astype(jnp.bfloat16)
    k = x2_ref[0].astype(jnp.bfloat16)
    # NT contraction over D — no explicit transpose of the key tile.
    s = lax.dot_general(q, k,
                        dimension_numbers=(((1,), (1,)), ((), ())),
                        preferred_element_type=jnp.float32)        # (TQ, S) f32

    # ---- numerically stable softmax along the key axis (f32) ----
    m = jnp.max(s, axis=-1, keepdims=True)
    e = jnp.exp(s - m)
    denom = jnp.sum(e, axis=-1, keepdims=True)
    probs = e * pl.reciprocal(denom, approx=True)                  # EUP slot

    # ---- dropout(p = 0.5); 1/(1-p) scale deferred to the (TQ, D) output ----
    if apply_dropout:
        rows = lax.broadcasted_iota(jnp.int32, (TQ, S), 0)
        cols = lax.broadcasted_iota(jnp.int32, (TQ, S), 1)
        # Unique counter per (batch, query, key) element => independent stream
        # per tile and per batch (no mask reuse across q tiles).
        ctr = (b * S + q_start + rows) * S + cols
        h = _mix32(ctr ^ (seed_ref[0] * jnp.int32(0x3C6EF35F)
                          + jnp.int32(0x1B873593)))
        keep = h >= 0                       # sign bit of mixed word ~ Bern(0.5)
        probs = jnp.where(keep, probs, 0.0)
        # TODO(synk): mask statistics match torch (p=0.5, 1/(1-p) scaling) but
        # cannot be bit-identical to torch's RNG stream.

    # ---- output tile = probs @ x1 : bf16 operands, f32 accumulation ----
    v = x1_ref[0].astype(jnp.bfloat16)
    out = lax.dot_general(probs.astype(jnp.bfloat16), v,
                          dimension_numbers=(((1,), (0,)), ((), ())),
                          preferred_element_type=jnp.float32)      # (TQ, D)
    if apply_dropout:
        out = out * _KEEP_SCALE
    o_ref[0] = out.astype(o_ref.dtype)


def _pick_q_tile(S):
    """Query-tile size: whole S when small, else a multiple-of-8 divisor."""
    if S <= 512:
        return S
    for cand in (512, 384, 256, 128, 64, 32, 16, 8):
        if S % cand == 0:
            return cand
    return S


def model_forward(x1, x2, seed=0, *, apply_dropout=True):
    """dropout(softmax((x1 @ x2^T) / 8)) @ x1, all inside one Pallas kernel."""
    assert x1.ndim == 3 and x1.shape == x2.shape, "x1/x2 must share (B, S, D)"
    B, S, D = x1.shape
    TQ = _pick_q_tile(S)
    n_q = S // TQ
    seed_arr = jnp.array([seed], dtype=jnp.int32)

    # Explicit VMEM budget: double-buffered (1,S,D) inputs, (1,TQ,D) output,
    # plus (TQ,S)-class temporaries; clamped under v7x's 64 MiB physical VMEM.
    # TODO(synk): for very long S, add a key-tile grid axis with online softmax
    # so x1/x2 no longer need to be fully resident per batch element.
    est = 4 * (2 * 2 * S * D + 2 * TQ * D + 8 * TQ * S) + (4 << 20)
    vmem_limit = int(min(max(est, 16 << 20), 60 << 20))

    grid_spec = pltpu.PrefetchScalarGridSpec(
        num_scalar_prefetch=1,
        grid=(B, n_q),
        in_specs=[
            pl.BlockSpec((1, S, D), lambda b, q, seed: (b, 0, 0)),   # x1
            pl.BlockSpec((1, S, D), lambda b, q, seed: (b, 0, 0)),   # x2
        ],
        out_specs=pl.BlockSpec((1, TQ, D), lambda b, q, seed: (b, q, 0)),
    )

    kernel = functools.partial(_attn_dropout_kernel, apply_dropout=apply_dropout)
    return pl.pallas_call(
        kernel,
        out_shape=jax.ShapeDtypeStruct((B, S, D), jnp.float32),
        grid_spec=grid_spec,
        compiler_params=pltpu.CompilerParams(
            # Batch elements are independent -> shardable across v7x's two TCs;
            # q tiles stay sequential so the (1,S,D) input blocks stay resident.
            dimension_semantics=("parallel", "arbitrary"),
            vmem_limit_bytes=vmem_limit,
        ),
    )(seed_arr, x1, x2)


def _reference_no_dropout(x1, x2):
    qk = jnp.einsum("bqd,bkd->bqk", x1, x2) / 8.0
    p = jax.nn.softmax(qk, axis=-1)
    return jnp.einsum("bqk,bkd->bqd", p, x1)


if __name__ == "__main__":
    key = jax.random.PRNGKey(0)
    k1, k2 = jax.random.split(key)

    # The module implies hidden dim 64; pick small batch/seq for the demo.
    B, S, D = 2, 128, 64
    x1 = jax.random.normal(k1, (B, S, D), dtype=jnp.float32)
    x2 = jax.random.normal(k2, (B, S, D), dtype=jnp.float32)

    # Deterministic path (dropout disabled) checked against a pure-JAX reference
    # (loose tolerance: matmuls use bf16 operands with f32 accumulation).
    out_eval = jax.block_until_ready(model_forward(x1, x2, apply_dropout=False))
    ref = _reference_no_dropout(x1, x2)
    assert bool(jnp.allclose(out_eval, ref, rtol=5e-2, atol=5e-2)), \
        "eval-mode output does not match reference"

    # Training-mode forward (dropout p=0.5), as in the PyTorch module.
    out = jax.block_until_ready(model_forward(x1, x2, seed=0))
    assert out.shape == (B, S, D)
    assert out.dtype == jnp.float32
    assert bool(jnp.all(jnp.isfinite(out)))

    print("KERNEL_OK")
</pallas_src>

<mosaic_0001>
module attributes {stable_mosaic.version = 11 : i64} {
  func.func @_attn_dropout_kernel(%arg0: i32, %arg1: i32, %arg2: memref<1xi32, #tpu.memory_space<smem>>, %arg3: memref<1x128x64xf32, #tpu.memory_space<vmem>>, %arg4: memref<1x128x64xf32, #tpu.memory_space<vmem>>, %arg5: memref<1x128x64xf32, #tpu.memory_space<vmem>>) attributes {dimension_semantics = [#tpu.dimension_semantics<parallel>, #tpu.dimension_semantics<arbitrary>], iteration_bounds = array<i64: 2, 1>, scalar_prefetch = 1 : i64, scratch_operands = 0 : i64, tpu.core_type = #tpu.core_type<tc>, window_params = [{transform_indices = @transform_0, window_bounds = array<i64: 1, 128, 64>}, {transform_indices = @transform_1, window_bounds = array<i64: 1, 128, 64>}, {transform_indices = @transform_2, window_bounds = array<i64: 1, 128, 64>}]} {
    %c128_i32 = arith.constant 128 : i32
    %0 = arith.muli %arg1, %c128_i32 : i32
    %c0 = arith.constant 0 : index
    %1 = arith.index_cast %0 : i32 to index
    %c0_0 = arith.constant 0 : index
    %2 = vector.load %arg3[%c0, %1, %c0_0] : memref<1x128x64xf32, #tpu.memory_space<vmem>>, vector<1x128x64xf32>
    %3 = vector.shape_cast %2 : vector<1x128x64xf32> to vector<128x64xf32>
    %cst = arith.constant 1.250000e-01 : f32
    %4 = vector.broadcast %cst : f32 to vector<128x64xf32>
    %5 = arith.mulf %3, %4 : vector<128x64xf32>
    %6 = arith.truncf %5 : vector<128x64xf32> to vector<128x64xbf16>
    %c0_1 = arith.constant 0 : index
    %c0_2 = arith.constant 0 : index
    %c0_3 = arith.constant 0 : index
    %7 = vector.load %arg4[%c0_1, %c0_2, %c0_3] : memref<1x128x64xf32, #tpu.memory_space<vmem>>, vector<1x128x64xf32>
    %8 = vector.shape_cast %7 : vector<1x128x64xf32> to vector<128x64xf32>
    %9 = arith.truncf %8 : vector<128x64xf32> to vector<128x64xbf16>
    %cst_4 = arith.constant dense<0.000000e+00> : vector<128x128xf32>
    %10 = tpu.matmul %6, %9, %cst_4 {dimension_numbers = #tpu.dot_dimension_numbers<[1], [1], [0], [0], [0, 0, 1, 0], [], []>} : vector<128x64xbf16>, vector<128x64xbf16>, vector<128x128xf32> -> vector<128x128xf32>
    %cst_5 = arith.constant dense<0xFF800000> : vector<128xf32>
    %11 = vector.multi_reduction <maximumf>, %10, %cst_5 [1] : vector<128x128xf32> to vector<128xf32>
    %12 = vector.shape_cast %11 : vector<128xf32> to vector<128x1xf32>
    %13 = vector.broadcast %12 : vector<128x1xf32> to vector<128x128xf32>
    %14 = arith.subf %10, %13 : vector<128x128xf32>
    %15 = math.exp %14 : vector<128x128xf32>
    %cst_6 = arith.constant dense<0.000000e+00> : vector<128xf32>
    %16 = vector.multi_reduction <add>, %15, %cst_6 [1] : vector<128x128xf32> to vector<128xf32>
    %17 = vector.shape_cast %16 : vector<128xf32> to vector<128x1xf32>
    %18 = tpu.reciprocal %17 {approx = true} : vector<128x1xf32> -> vector<128x1xf32>
    %19 = vector.broadcast %18 : vector<128x1xf32> to vector<128x128xf32>
    %20 = arith.mulf %15, %19 : vector<128x128xf32>
    %c0_7 = arith.constant 0 : index
    %c0_8 = arith.constant 0 : index
    %c0_9 = arith.constant 0 : index
    %21 = vector.load %arg3[%c0_7, %c0_8, %c0_9] : memref<1x128x64xf32, #tpu.memory_space<vmem>>, vector<1x128x64xf32>
    %22 = vector.shape_cast %21 : vector<1x128x64xf32> to vector<128x64xf32>
    %23 = arith.truncf %22 : vector<128x64xf32> to vector<128x64xbf16>
    %24 = arith.truncf %20 : vector<128x128xf32> to vector<128x128xbf16>
    %cst_10 = arith.constant dense<0.000000e+00> : vector<128x64xf32>
    %25 = tpu.matmul %24, %23, %cst_10 {dimension_numbers = #tpu.dot_dimension_numbers<[1], [0], [0], [1], [0, 0, 1, 1], [], []>} : vector<128x128xbf16>, vector<128x64xbf16>, vector<128x64xf32> -> vector<128x64xf32>
    %c0_11 = arith.constant 0 : index
    %c0_12 = arith.constant 0 : index
    %c0_13 = arith.constant 0 : index
    %26 = vector.load %arg5[%c0_11, %c0_12, %c0_13] : memref<1x128x64xf32, #tpu.memory_space<vmem>>, vector<1x128x64xf32>
    %27 = vector.shape_cast %26 : vector<1x128x64xf32> to vector<128x64xf32>
    %28 = vector.shape_cast %25 : vector<128x64xf32> to vector<1x128x64xf32>
    tpu.vector_store %arg5[%c0_11, %c0_12, %c0_13], %28 {strides = array<i32>} : memref<1x128x64xf32, #tpu.memory_space<vmem>>, vector<1x128x64xf32>,
    return
  }
  func.func @transform_0(%arg0: i32, %arg1: i32, %arg2: memref<1xi32, #tpu.memory_space<smem>>) -> (i32, i32, i32) {
    %c0_i32 = arith.constant 0 : i32
    %c0_i32_0 = arith.constant 0 : i32
    %c0_i32_1 = arith.constant 0 : i32
    return %arg0, %c0_i32, %c0_i32_0 : i32, i32, i32
  }
  func.func @transform_1(%arg0: i32, %arg1: i32, %arg2: memref<1xi32, #tpu.memory_space<smem>>) -> (i32, i32, i32) {
    %c0_i32 = arith.constant 0 : i32
    %c0_i32_0 = arith.constant 0 : i32
    %c0_i32_1 = arith.constant 0 : i32
    return %arg0, %c0_i32, %c0_i32_0 : i32, i32, i32
  }
  func.func @transform_2(%arg0: i32, %arg1: i32, %arg2: memref<1xi32, #tpu.memory_space<smem>>) -> (i32, i32, i32) {
    %c0_i32 = arith.constant 0 : i32
    %c0_i32_0 = arith.constant 0 : i32
    return %arg0, %arg1, %c0_i32 : i32, i32, i32
  }
}

</mosaic_0001>

<bundles_post_ra>
// kernel: tpu_custom_call.1
= control target key start
LH: loop header
LB: loop body
LE: loop exit
PB: predicated region body
PF: predicated region fallthrough
CT: control target
= control target key end

     0   :  { %s1046_s12 = smov 0   ;;  %s1048_s13 = smov 0   ;;  %s1321_s0 = inlined_call_operand.<no memory space> [shape: s32[1], index: 0, kind: input, shape index: {}]   ;;  %s1322_s1 = inlined_call_operand.vmem [shape: f32[2,128,64], index: 1, kind: input, shape index: {}]   ;;  %s1323_s2 = inlined_call_operand.vmem [shape: f32[2,128,64], index: 2, kind: input, shape index: {}]   ;;  %s1324_s3 = inlined_call_operand.vmem [shape: f32[2,128,64], index: 3, kind: output, shape index: {}]  }
   0x1   :  { %s1050_s14 = smov 0  }
   0x2 LB: > { %s26_s0 = sadd.s32 1, %s1020_s13  ;;  %p790_p0 = scmp.ge.s32.totalorder %s1024_s14, 1  ;;  %s1024_s14 = sphi %s1050_s14, %s14_s14   ;;  %s1020_s13 = sphi %s1048_s13, %s1326_s13   ;;  %s1016_s12 = sphi %s1046_s12, %s1325_s12  }
   0x3   : > { %p28_p1 = scmp.ge.s32.totalorder %s26_s0, 2  ;;  %p138_p2 = scmp.lt.s32.totalorder %s1024_s14, 3 }
   0x5   : > { %s1328_s0 = smov (%p28_p1, %s26_s0), 0  ;;  %p139_p3 = pnand %p790_p0, %p138_p2 }
   0x6   : > { %p169_p4 = scmp.lt.s32.totalorder (!%p139_p3), %s1016_s12, 1 }
   0x7   : > { %142 = sbr.rel (%p139_p3) target bundleno = 822 (0x336), region = 28 }
   0xc   : > { %s1330_s12 = smov (!%p169_p4, %s1016_s12), 1  ;;  %vm256_vm0 = vcmask 523264  }
   0xd   : > { %s1064_s15 = sshll.u32 %s1330_s12, 7 }
   0xe   : > { %s1070_s18 = scalar_lea.vmem %s1323_s2, %s1064_s15  ;;  %s1080_s21 = scalar_lea.vmem %s1322_s1, %s1064_s15 }
   0xf   : > { %v246_v0 = vld [vmem:[%s1070_s18 + $0x70] sm:$0xff]  ;;  %v247_v1 = vld [vmem:[%s1070_s18 + $0x78] sm:$0xff]  ;;  %v244_v2 = vld [vmem:[%s1070_s18 + $0x60] sm:$0xff]  ;;  %s1278_s24 = scalar_lea.vmem %s1324_s3, %s1064_s15 }
  0x10   : > { %v255_v3 = vpack.c.bf16 %v247_v1, %v246_v0  ;;  %v245_v4 = vld [vmem:[%s1070_s18 + $0x68] sm:$0xff]  ;;  %v1086_v7 = vld [vmem:[%s1080_s21] sm:$0xff]  ;;  %v242_v9 = vld [vmem:[%s1070_s18 + $0x50] sm:$0xff] }
  0x11   : > { %v254_v5 = vpack.c.bf16 %v245_v4, %v244_v2  ;;  %v1089_v8 = vld [vmem:[%s1080_s21 + $0x8] sm:$0xff]  ;;  %v243_v10 = vld [vmem:[%s1070_s18 + $0x58] sm:$0xff]  ;;  %v208_v11 = vmul.f32 0.125, %v1086_v7  ;;  %v240_v16 = vld [vmem:[%s1070_s18 + $0x40] sm:$0xff] }
  0x12   : > { %906 = vmatprep.subr.msk.bf16.mxu0 %vm256_vm0, %v255_v3  ;;  %v303_v6 = vsel %vm256_vm0, %v255_v3, 0  ;;  %v209_v12 = vmul.f32 0.125, %v1089_v8  ;;  %v253_v14 = vpack.c.bf16 %v243_v10, %v242_v9  ;;  %v241_v17 = vld [vmem:[%s1070_s18 + $0x48] sm:$0xff]  ;;  %v238_v20 = vld [vmem:[%s1070_s18 + $0x30] sm:$0xff]  ;;  %v239_v21 = vld [vmem:[%s1070_s18 + $0x38] sm:$0xff] }
  0x13   : > { %843 = vmatpush3.bf16.xpose.msra.mxu0 %v303_v6  ;;  %v300_v13 = vsel %vm256_vm0, %v254_v5, 0  ;;  %v252_v19 = vpack.c.bf16 %v241_v17, %v240_v16  ;;  %v251_v23 = vpack.c.bf16 %v239_v21, %v238_v20  ;;  %v236_v24 = vld [vmem:[%s1070_s18 + $0x20] sm:$0xff]  ;;  %v237_v25 = vld [vmem:[%s1070_s18 + $0x28] sm:$0xff]  ;;  %v234_v28 = vld [vmem:[%s1070_s18 + $0x10] sm:$0xff] }
  0x14   : > { %907 = vmatprep.subr.msk.bf16.mxu0 %vm256_vm0, %v254_v5  ;;  %v224_v15 = vpack.c.bf16 %v209_v12, %v208_v11  ;;  %v297_v18 = vsel %vm256_vm0, %v253_v14, 0  ;;  %v250_v27 = vpack.c.bf16 %v237_v25, %v236_v24  ;;  %v235_v29 = vld [vmem:[%s1070_s18 + $0x18] sm:$0xff]  ;;  %v232_v32 = vld [vmem:[%s1070_s18] sm:$0xff]  ;;  %v233_v33 = vld [vmem:[%s1070_s18 + $0x8] sm:$0xff] }
  0x15   : > { %v294_v22 = vsel %vm256_vm0, %v252_v19, 0  ;;  %v291_v26 = vsel %vm256_vm0, %v251_v23, 0  ;;  %v249_v31 = vpack.c.bf16 %v235_v29, %v234_v28  ;;  %v248_v35 = vpack.c.bf16 %v233_v33, %v232_v32  ;;  %v1119_v36 = vld [vmem:[%s1080_s21 + $0x10] sm:$0xff]  ;;  %v1122_v37 = vld [vmem:[%s1080_s21 + $0x18] sm:$0xff]  ;;  %v1126_v39 = vld [vmem:[%s1080_s21 + $0x20] sm:$0xff] }
  0x16   : > { %858 = vmatprep.mubr.msk.bf16.mxu0 %vm256_vm0, %v224_v15  ;;  %v288_v30 = vsel %vm256_vm0, %v250_v27, 0  ;;  %v1129_v40 = vld [vmem:[%s1080_s21 + $0x28] sm:$0xff]  ;;  %v210_v41 = vmul.f32 0.125, %v1119_v36  ;;  %v211_v42 = vmul.f32 0.125, %v1122_v37  ;;  %v212_v43 = vmul.f32 0.125, %v1126_v39  ;;  %v1136_v47 = vld [vmem:[%s1080_s21 + $0x30] sm:$0xff] }
  0x17   : > { %v285_v34 = vsel %vm256_vm0, %v249_v31, 0  ;;  %v282_v38 = vsel %vm256_vm0, %v248_v35, 0  ;;  %v213_v44 = vmul.f32 0.125, %v1129_v40  ;;  %v1139_v48 = vld [vmem:[%s1080_s21 + $0x38] sm:$0xff]  ;;  %v1142_v49 = vld [vmem:[%s1080_s21 + $0x40] sm:$0xff]  ;;  %v1145_v50 = vld [vmem:[%s1080_s21 + $0x48] sm:$0xff] }
  0x18   : > { %v225_v45 = vpack.c.bf16 %v211_v42, %v210_v41  ;;  %v214_v51 = vmul.f32 0.125, %v1136_v47  ;;  %v215_v52 = vmul.f32 0.125, %v1139_v48  ;;  %v216_v53 = vmul.f32 0.125, %v1142_v49  ;;  %v1154_v57 = vld [vmem:[%s1080_s21 + $0x50] sm:$0xff]  ;;  %v1157_v58 = vld [vmem:[%s1080_s21 + $0x58] sm:$0xff]  ;;  %v204_v59 = vld [vmem:[%s1080_s21 + $0x60] sm:$0xff] }
  0x19   : > { %v226_v46 = vpack.c.bf16 %v213_v44, %v212_v43  ;;  %v217_v54 = vmul.f32 0.125, %v1145_v50  ;;  %v205_v60 = vld [vmem:[%s1080_s21 + $0x68] sm:$0xff]  ;;  %v218_v61 = vmul.f32 0.125, %v1154_v57  ;;  %v219_v62 = vmul.f32 0.125, %v1157_v58  ;;  %v206_v3 = vld [vmem:[%s1080_s21 + $0x70] sm:$0xff]  ;;  %v207_v4 = vld [vmem:[%s1080_s21 + $0x78] sm:$0xff] }
  0x1a   : > { %v227_v55 = vpack.c.bf16 %v215_v52, %v214_v51  ;;  %v220_v63 = vmul.f32 0.125, %v204_v59  ;;  %v221_v0 = vmul.f32 0.125, %v205_v60  ;;  %v222_v5 = vmul.f32 0.125, %v206_v3 }
  0x1b   : > { %845 = vmatpush3.bf16.xpose.msra.mxu0 %v300_v13  ;;  %v228_v56 = vpack.c.bf16 %v217_v54, %v216_v53  ;;  %v229_v1 = vpack.c.bf16 %v219_v62, %v218_v61  ;;  %v223_v6 = vmul.f32 0.125, %v207_v4 }
  0x1c   : > { %908 = vmatprep.subr.msk.bf16.mxu0 %vm256_vm0, %v253_v14  ;;  %v230_v2 = vpack.c.bf16 %v221_v0, %v220_v63 }
  0x1d   : > { %v231_v9 = vpack.c.bf16 %v223_v6, %v222_v5 }
  0x23   : > { %847 = vmatpush3.bf16.xpose.msra.mxu0 %v297_v18 }
  0x24   : > { %909 = vmatprep.subr.msk.bf16.mxu0 %vm256_vm0, %v252_v19 }
  0x2b   : > { %849 = vmatpush3.bf16.xpose.msra.mxu0 %v294_v22 }
  0x2c   : > { %910 = vmatprep.subr.msk.bf16.mxu0 %vm256_vm0, %v251_v23 }
  0x33   : > { %851 = vmatpush3.bf16.xpose.msra.mxu0 %v291_v26  ;;  %v569_v26 = vpack.c.bf16 %v207_v4, %v206_v3 }
  0x34   : > { %911 = vmatprep.subr.msk.bf16.mxu0 %vm256_vm0, %v250_v27  ;;  %v568_v27 = vpack.c.bf16 %v205_v60, %v204_v59 }
  0x35   : > { %874 = vmatprep.subr.bf16.mxu1 %v569_v26 }
  0x36   : > { %875 = vmatpush3.bf16.msra.mxu1 %v569_v26 }
  0x37   : > { %876 = vmatprep.subr.bf16.mxu1 %v568_v27 }
  0x3a   : > { %877 = vmatpush3.bf16.msra.mxu1 %v568_v27 }
  0x3b   : > { %853 = vmatpush3.bf16.xpose.msra.mxu0 %v288_v30 }
  0x3c   : > { %912 = vmatprep.subr.msk.bf16.mxu0 %vm256_vm0, %v249_v31 }
  0x43   : > { %855 = vmatpush3.bf16.xpose.msra.mxu0 %v285_v34 }
  0x44   : > { %913 = vmatprep.subr.msk.bf16.mxu0 %vm256_vm0, %v248_v35 }
  0x4b   : > { %857 = vmatpush3.bf16.xpose.msra.mxu0 %v282_v38 }
  0x52   : > { %859 = vmatmul.mubr.msk.bf16.vlgmr.msra.gmra.mxu0 %vm256_vm0, %v225_v45 }
  0x53   : > { %862 = vmatprep.mubr.msk.bf16.mxu0 %vm256_vm0, %v226_v46 }
  0x5a   : > { %863 = vmatmul.mubr.msk.bf16.gmra.mxu0 %vm256_vm0, %v227_v55 }
  0x5b   : > { %866 = vmatprep.mubr.msk.bf16.mxu0 %vm256_vm0, %v228_v56 }
  0x62   : > { %867 = vmatmul.mubr.msk.bf16.gmra.mxu0 %vm256_vm0, %v229_v1 }
  0x63   : > { %870 = vmatprep.mubr.msk.bf16.mxu0 %vm256_vm0, %v230_v2 }
  0x6a   : > { %871 = vmatmul.mubr.msk.bf16.gmra.mxu0 %vm256_vm0, %v231_v9 }
 0x112   : > { %v860_v10 = vpop.f32.mrf.mxu0 }
 0x113   : > { %406 = vmax.xlane.f32.xlu1 %v860_v10 }
 0x114   : > { %v339_v11 = vpop.f32.mrf.mxu0 }
 0x115   : > { %402 = vmax.xlane.f32.xlu0 %v339_v11 }
 0x116   : > { %v861_v12 = vpop.f32.mrf.mxu0 }
 0x117   : > { %408 = vmax.xlane.f32.xlu1 %v861_v12 }
 0x118   : > { %v342_v13 = vpop.f32.mrf.mxu0 }
 0x119   : > { %404 = vmax.xlane.f32.xlu0 %v342_v13 }
 0x11a   : > { %v864_v14 = vpop.f32.mrf.mxu0 }
 0x11c   : > { %v355_v15 = vpop.f32.mrf.mxu0 }
 0x11d   : > { %410 = vmax.xlane.f32.xlu0 %v355_v15 }
 0x11e   : > { %v865_v16 = vpop.f32.mrf.mxu0 }
 0x120   : > { %v358_v17 = vpop.f32.mrf.mxu0 }
 0x121   : > { %414 = vmax.xlane.f32.xlu0 %v864_v14  ;;  %412 = vmax.xlane.f32.xlu1 %v358_v17 }
 0x122   : > { %v1170_v18 = vpop.f32.mrf.mxu0 }
 0x124   : > { %v371_v19 = vpop.f32.mrf.mxu0 }
 0x125   : > { %416 = vmax.xlane.f32.xlu1 %v865_v16  ;;  %418 = vmax.xlane.f32.xlu0 %v371_v19 }
 0x126   : > { %v1172_v20 = vpop.f32.mrf.mxu0 }
 0x128   : > { %v1174_v21 = vpop.f32.mrf.mxu0 }
 0x129   : > { %422 = vmax.xlane.f32.xlu0 %v1170_v18  ;;  %420 = vmax.xlane.f32.xlu1 %v1174_v21 }
 0x12a   : > { %v1178_v22 = vpop.f32.mrf.mxu0 }
 0x12c   : > { %v1180_v23 = vpop.f32.mrf.mxu0 }
 0x12d   : > { %424 = vmax.xlane.f32.xlu1 %v1172_v20  ;;  %426 = vmax.xlane.f32.xlu0 %v1180_v23 }
 0x12e   : > { %v1184_v24 = vpop.f32.mrf.mxu0 }
 0x130   : > { %v1186_v25 = vpop.f32.mrf.mxu0 }
 0x131   : > { %430 = vmax.xlane.f32.xlu0 %v1178_v22  ;;  %428 = vmax.xlane.f32.xlu1 %v1186_v25 }
 0x135   : > { %432 = vmax.xlane.f32.xlu1 %v1184_v24 }
 0x19c   : > { %v407_v28 = vpop.xlane.xlu1 %406 }
 0x19d   : > { %v436_v29 = vsub.f32 %v860_v10, %v407_v28 }
 0x19e   : > { %v403_v30 = vpop.xlane.xlu0 %402 }
 0x19f   : > { %v434_v31 = vsub.f32 %v339_v11, %v403_v30  ;;  %v454_v34 = vmul.f32 1.442695, %v436_v29 }
 0x1a0   : > { %v409_v32 = vpop.xlane.xlu1 %408 }
 0x1a1   : > { %v450_v33 = vmul.f32 1.442695, %v434_v31  ;;  %v437_v35 = vsub.f32 %v861_v12, %v409_v32 }
 0x1a2   : > { %v405_v38 = vpop.xlane.xlu0 %404 }
 0x1a3   : > { %938 = vpow2.f32 %v450_v33  ;;  %v435_v41 = vsub.f32 %v342_v13, %v405_v38  ;;  %v456_v43 = vmul.f32 1.442695, %v437_v35 }
 0x1a4   : > { %940 = vpow2.f32 %v454_v34 }
 0x1a5   : > { %v452_v42 = vmul.f32 1.442695, %v435_v41  ;;  %v563_v41 = vpack.c.bf16 %v1122_v37, %v1119_v36 }
 0x1a6   : > { %v411_v44 = vpop.xlane.xlu0 %410 }
 0x1a7   : > { %942 = vpow2.f32 %v452_v42  ;;  %v438_v45 = vsub.f32 %v355_v15, %v411_v44 }
 0x1a8   : > { %944 = vpow2.f32 %v456_v43 }
 0x1a9   : > { %v458_v46 = vmul.f32 1.442695, %v438_v45 }
 0x1aa   : > { %v415_v51 = vpop.xlane.xlu0 %414  ;;  %v413_v52 = vpop.xlane.xlu1 %412 }
 0x1ab   : > { %946 = vpow2.f32 %v458_v46  ;;  %v440_v53 = vsub.f32 %v864_v14, %v415_v51  ;;  %v439_v54 = vsub.f32 %v358_v17, %v413_v52 }
 0x1ad   : > { %v462_v55 = vmul.f32 1.442695, %v440_v53  ;;  %v460_v56 = vmul.f32 1.442695, %v439_v54 }
 0x1ae   : > { %v417_v59 = vpop.xlane.xlu1 %416  ;;  %v419_v60 = vpop.xlane.xlu0 %418 }
 0x1af   : > { %948 = vpow2.f32 %v462_v55  ;;  %v441_v61 = vsub.f32 %v865_v16, %v417_v59  ;;  %v442_v62 = vsub.f32 %v371_v19, %v419_v60 }
 0x1b0   : > { %v1191_v63 = vpop.eup %938  ;;  %950 = vpow2.f32 %v460_v56 }
 0x1b1   : > { %v464_v0 = vmul.f32 1.442695, %v441_v61  ;;  %v466_v1 = vmul.f32 1.442695, %v442_v62  ;;  %482 = vadd.xlane.f32.xlu0 %v1191_v63  ;;  %v1194_v4 = vpop.eup %940 }
 0x1b2   : > { %v423_v2 = vpop.xlane.xlu0 %422  ;;  %v421_v3 = vpop.xlane.xlu1 %420 }
 0x1b3   : > { %952 = vpow2.f32 %v464_v0  ;;  %v444_v5 = vsub.f32 %v1170_v18, %v423_v2  ;;  %v443_v6 = vsub.f32 %v1174_v21, %v421_v3 }
 0x1b4   : > { %v1198_v9 = vpop.eup %942  ;;  %954 = vpow2.f32 %v466_v1 }
 0x1b5   : > { %v470_v10 = vmul.f32 1.442695, %v444_v5  ;;  %v468_v11 = vmul.f32 1.442695, %v443_v6  ;;  %486 = vadd.xlane.f32.xlu0 %v1194_v4  ;;  %484 = vadd.xlane.f32.xlu1 %v1198_v9  ;;  %v1202_v14 = vpop.eup %944 }
 0x1b6   : > { %v425_v12 = vpop.xlane.xlu1 %424  ;;  %v427_v13 = vpop.xlane.xlu0 %426 }
 0x1b7   : > { %956 = vpow2.f32 %v470_v10  ;;  %v445_v15 = vsub.f32 %v1172_v20, %v425_v12  ;;  %v446_v16 = vsub.f32 %v1180_v23, %v427_v13  ;;  %v567_v20 = vpack.c.bf16 %v1157_v58, %v1154_v57 }
 0x1b8   : > { %v1206_v17 = vpop.eup %946  ;;  %958 = vpow2.f32 %v468_v11  ;;  %v566_v57 = vpack.c.bf16 %v1145_v50, %v1142_v49  ;;  %v564_v50 = vpack.c.bf16 %v1129_v40, %v1126_v39  ;;  %v562_v40 = vpack.c.bf16 %v1089_v8, %v1086_v7 }
 0x1b9   : > { %v472_v18 = vmul.f32 1.442695, %v445_v15  ;;  %v474_v19 = vmul.f32 1.442695, %v446_v16  ;;  %490 = vadd.xlane.f32.xlu0 %v1206_v17  ;;  %488 = vadd.xlane.f32.xlu1 %v1202_v14 }
 0x1ba   : > { %v431_v21 = vpop.xlane.xlu0 %430  ;;  %v429_v26 = vpop.xlane.xlu1 %428  ;;  %878 = vmatprep.subr.bf16.mxu1 %v567_v20 }
 0x1bb   : > { %960 = vpow2.f32 %v472_v18  ;;  %v448_v27 = vsub.f32 %v1178_v22, %v431_v21  ;;  %v447_v28 = vsub.f32 %v1186_v25, %v429_v26  ;;  %879 = vmatpush3.bf16.msra.mxu1 %v567_v20 }
 0x1bc   : > { %v1214_v23 = vpop.eup %948  ;;  %962 = vpow2.f32 %v474_v19  ;;  %880 = vmatprep.subr.bf16.mxu1 %v566_v57 }
 0x1bd   : > { %v1216_v29 = vpop.eup %950  ;;  %v478_v30 = vmul.f32 1.442695, %v448_v27  ;;  %v476_v31 = vmul.f32 1.442695, %v447_v28  ;;  %494 = vadd.xlane.f32.xlu0 %v1214_v23 }
 0x1be   : > { %492 = vadd.xlane.f32.xlu1 %v1216_v29  ;;  %v433_v32 = vpop.xlane.xlu1 %432 }
 0x1bf   : > { %964 = vpow2.f32 %v478_v30  ;;  %v449_v22 = vsub.f32 %v1184_v24, %v433_v32  ;;  %881 = vmatpush3.bf16.msra.mxu1 %v566_v57  ;;  %v565_v24 = vpack.c.bf16 %v1139_v48, %v1136_v47 }
 0x1c0   : > { %v1221_v25 = vpop.eup %952  ;;  %966 = vpow2.f32 %v476_v31 }
 0x1c1   : > { %v1225_v58 = vpop.eup %954  ;;  %v480_v33 = vmul.f32 1.442695, %v449_v22  ;;  %882 = vmatprep.subr.bf16.mxu1 %v565_v24 }
 0x1c2   : > { %498 = vadd.xlane.f32.xlu0 %v1225_v58  ;;  %496 = vadd.xlane.f32.xlu1 %v1221_v25 }
 0x1c3   : > { %968 = vpow2.f32 %v480_v33  ;;  %883 = vmatpush3.bf16.msra.mxu1 %v565_v24 }
 0x1c4   : > { %v1229_v34 = vpop.eup %956  ;;  %884 = vmatprep.subr.bf16.mxu1 %v564_v50 }
 0x1c5   : > { %v1233_v35 = vpop.eup %958 }
 0x1c6   : > { %502 = vadd.xlane.f32.xlu0 %v1229_v34  ;;  %500 = vadd.xlane.f32.xlu1 %v1233_v35 }
 0x1c7   : > { %885 = vmatpush3.bf16.msra.mxu1 %v564_v50 }
 0x1c8   : > { %v1237_v49 = vpop.eup %960  ;;  %886 = vmatprep.subr.bf16.mxu1 %v563_v41 }
 0x1c9   : > { %v1241_v38 = vpop.eup %962 }
 0x1ca   : > { %506 = vadd.xlane.f32.xlu0 %v1241_v38  ;;  %504 = vadd.xlane.f32.xlu1 %v1237_v49 }
 0x1cb   : > { %887 = vmatpush3.bf16.msra.mxu1 %v563_v41 }
 0x1cc   : > { %v1245_v47 = vpop.eup %964  ;;  %888 = vmatprep.subr.bf16.mxu1 %v562_v40 }
 0x1cd   : > { %v1247_v48 = vpop.eup %966 }
 0x1ce   : > { %510 = vadd.xlane.f32.xlu0 %v1245_v47  ;;  %508 = vadd.xlane.f32.xlu1 %v1247_v48 }
 0x1cf   : > { %889 = vmatpush3.bf16.msra.mxu1 %v562_v40 }
 0x1d0   : > { %v1253_v39 = vpop.eup %968 }
 0x1d2   : > { %512 = vadd.xlane.f32.xlu1 %v1253_v39 }
 0x23a   : > { %v483_v42 = vpop.xlane.xlu0 %482 }
 0x23b   : > { %970 = vrcp.f32 %v483_v42 }
 0x23e   : > { %v487_v43 = vpop.xlane.xlu0 %486  ;;  %v485_v44 = vpop.xlane.xlu1 %484 }
 0x23f   : > { %972 = vrcp.f32 %v485_v44 }
 0x240   : > { %974 = vrcp.f32 %v487_v43 }
 0x242   : > { %v491_v36 = vpop.xlane.xlu0 %490  ;;  %v489_v37 = vpop.xlane.xlu1 %488 }
 0x243   : > { %976 = vrcp.f32 %v489_v37 }
 0x244   : > { %978 = vrcp.f32 %v491_v36 }
 0x246   : > { %v495_v45 = vpop.xlane.xlu0 %494 }
 0x247   : > { %v493_v46 = vpop.xlane.xlu1 %492 }
 0x248   : > { %980 = vrcp.f32 %v493_v46  ;;  %v971_v51 = vpop.eup %970 }
 0x249   : > { %982 = vrcp.f32 %v495_v45  ;;  %v530_v53 = vmul.f32 %v971_v51, %v1191_v63 }
 0x24b   : > { %v499_v7 = vpop.xlane.xlu0 %498  ;;  %v497_v8 = vpop.xlane.xlu1 %496 }
 0x24c   : > { %v973_v52 = vpop.eup %972  ;;  %984 = vrcp.f32 %v497_v8 }
 0x24d   : > { %v531_v54 = vmul.f32 %v973_v52, %v1198_v9  ;;  %v975_v55 = vpop.eup %974  ;;  %986 = vrcp.f32 %v499_v7 }
 0x24e   : > { %v532_v62 = vmul.f32 %v975_v55, %v1194_v4 }
 0x24f   : > { %v503_v56 = vpop.xlane.xlu0 %502  ;;  %v501_v59 = vpop.xlane.xlu1 %500  ;;  %v570_v60 = vpack.c.bf16 %v531_v54, %v530_v53 }
 0x250   : > { %v977_v61 = vpop.eup %976  ;;  %988 = vrcp.f32 %v501_v59 }
 0x251   : > { %890 = vmatprep.mubr.bf16.mxu1 %v570_v60  ;;  %v533_v0 = vmul.f32 %v977_v61, %v1202_v14  ;;  %v979_v1 = vpop.eup %978  ;;  %990 = vrcp.f32 %v503_v56 }
 0x252   : > { %v534_v6 = vmul.f32 %v979_v1, %v1206_v17 }
 0x253   : > { %v507_v2 = vpop.xlane.xlu0 %506  ;;  %v505_v3 = vpop.xlane.xlu1 %504  ;;  %v571_v5 = vpack.c.bf16 %v533_v0, %v532_v62 }
 0x254   : > { %992 = vrcp.f32 %v505_v3 }
 0x255   : > { %v981_v63 = vpop.eup %980  ;;  %891 = vmatmul.mubr.bf16.vlgmr.msra.gmra.mxu1 %v571_v5  ;;  %994 = vrcp.f32 %v507_v2 }
 0x256   : > { %v535_v9 = vmul.f32 %v981_v63, %v1216_v29  ;;  %v983_v12 = vpop.eup %982 }
 0x257   : > { %v511_v10 = vpop.xlane.xlu0 %510  ;;  %v509_v11 = vpop.xlane.xlu1 %508  ;;  %v536_v15 = vmul.f32 %v983_v12, %v1214_v23 }
 0x258   : > { %v572_v13 = vpack.c.bf16 %v535_v9, %v534_v6  ;;  %996 = vrcp.f32 %v509_v11 }
 0x259   : > { %v985_v4 = vpop.eup %984  ;;  %998 = vrcp.f32 %v511_v10 }
 0x25a   : > { %894 = vmatprep.mubr.bf16.mxu1 %v572_v13  ;;  %v537_v16 = vmul.f32 %v985_v4, %v1221_v25  ;;  %v987_v18 = vpop.eup %986 }
 0x25b   : > { %v513_v14 = vpop.xlane.xlu1 %512  ;;  %v538_v21 = vmul.f32 %v987_v18, %v1225_v58 }
 0x25c   : > { %1000 = vrcp.f32 %v513_v14  ;;  %v573_v19 = vpack.c.bf16 %v537_v16, %v536_v15 }
 0x25d   : > { %v989_v17 = vpop.eup %988 }
 0x25e   : > { %895 = vmatmul.mubr.bf16.gmra.mxu1 %v573_v19  ;;  %v539_v26 = vmul.f32 %v989_v17, %v1233_v35  ;;  %v991_v27 = vpop.eup %990 }
 0x25f   : > { %v540_v29 = vmul.f32 %v991_v27, %v1229_v34 }
 0x260   : > { %v574_v28 = vpack.c.bf16 %v539_v26, %v538_v21 }
 0x261   : > { %v993_v20 = vpop.eup %992 }
 0x262   : > { %898 = vmatprep.mubr.bf16.mxu1 %v574_v28  ;;  %v541_v23 = vmul.f32 %v993_v20, %v1237_v49  ;;  %v995_v30 = vpop.eup %994 }
 0x263   : > { %v542_v25 = vmul.f32 %v995_v30, %v1241_v38 }
 0x264   : > { %v575_v31 = vpack.c.bf16 %v541_v23, %v540_v29 }
 0x265   : > { %v997_v32 = vpop.eup %996 }
 0x266   : > { %v999_v22 = vpop.eup %998  ;;  %899 = vmatmul.mubr.bf16.gmra.mxu1 %v575_v31  ;;  %v543_v57 = vmul.f32 %v997_v32, %v1247_v48 }
 0x267   : > { %v544_v24 = vmul.f32 %v999_v22, %v1245_v47 }
 0x268   : > { %v576_v33 = vpack.c.bf16 %v543_v57, %v542_v25 }
 0x269   : > { %v1001_v58 = vpop.eup %1000 }
 0x26a   : > { %v545_v35 = vmul.f32 %v1001_v58, %v1253_v39  ;;  %902 = vmatprep.mubr.bf16.mxu1 %v576_v33 }
 0x26c   : > { %v577_v34 = vpack.c.bf16 %v545_v35, %v544_v24 }
 0x26e   : > { %903 = vmatmul.mubr.bf16.gmra.mxu1 %v577_v34 }
 0x315   : > { %v892_v49 = vpop.f32.mrf.mxu1 }
 0x316   : > { %677 = vst.msk [vmem:[%s1278_s24 + $0x10] sm:$0xff] %vm256_vm0, %v892_v49 }
 0x317   : > { %v612_v50 = vpop.f32.mrf.mxu1 }
 0x318   : > { %675 = vst.msk [vmem:[%s1278_s24] sm:$0xff] %vm256_vm0, %v612_v50 }
 0x319   : > { %v893_v38 = vpop.f32.mrf.mxu1 }
 0x31a   : > { %678 = vst.msk [vmem:[%s1278_s24 + $0x18] sm:$0xff] %vm256_vm0, %v893_v38 }
 0x31b   : > { %v615_v47 = vpop.f32.mrf.mxu1 }
 0x31c   : > { %676 = vst.msk [vmem:[%s1278_s24 + $0x8] sm:$0xff] %vm256_vm0, %v615_v47 }
 0x31e   : > { %v896_v48 = vpop.f32.mrf.mxu1 }
 0x31f   : > { %681 = vst.msk [vmem:[%s1278_s24 + $0x30] sm:$0xff] %vm256_vm0, %v896_v48 }
 0x320   : > { %v628_v41 = vpop.f32.mrf.mxu1 }
 0x321   : > { %679 = vst.msk [vmem:[%s1278_s24 + $0x20] sm:$0xff] %vm256_vm0, %v628_v41 }
 0x322   : > { %v897_v39 = vpop.f32.mrf.mxu1 }
 0x323   : > { %682 = vst.msk [vmem:[%s1278_s24 + $0x38] sm:$0xff] %vm256_vm0, %v897_v39 }
 0x324   : > { %v631_v40 = vpop.f32.mrf.mxu1 }
 0x325   : > { %680 = vst.msk [vmem:[%s1278_s24 + $0x28] sm:$0xff] %vm256_vm0, %v631_v40 }
 0x326   : > { %v900_v42 = vpop.f32.mrf.mxu1 }
 0x327   : > { %685 = vst.msk [vmem:[%s1278_s24 + $0x50] sm:$0xff] %vm256_vm0, %v900_v42 }
 0x328   : > { %v644_v43 = vpop.f32.mrf.mxu1 }
 0x329   : > { %683 = vst.msk [vmem:[%s1278_s24 + $0x40] sm:$0xff] %vm256_vm0, %v644_v43 }
 0x32a   : > { %v901_v44 = vpop.f32.mrf.mxu1 }
 0x32b   : > { %686 = vst.msk [vmem:[%s1278_s24 + $0x58] sm:$0xff] %vm256_vm0, %v901_v44 }
 0x32c   : > { %v647_v36 = vpop.f32.mrf.mxu1 }
 0x32d   : > { %684 = vst.msk [vmem:[%s1278_s24 + $0x48] sm:$0xff] %vm256_vm0, %v647_v36 }
 0x32e   : > { %v904_v37 = vpop.f32.mrf.mxu1 }
 0x32f   : > { %689 = vst.msk [vmem:[%s1278_s24 + $0x70] sm:$0xff] %vm256_vm0, %v904_v37 }
 0x330   : > { %v660_v45 = vpop.f32.mrf.mxu1 }
 0x331   : > { %687 = vst.msk [vmem:[%s1278_s24 + $0x60] sm:$0xff] %vm256_vm0, %v660_v45 }
 0x332   : > { %v905_v46 = vpop.f32.mrf.mxu1 }
 0x333   : > { %690 = vst.msk [vmem:[%s1278_s24 + $0x78] sm:$0xff] %vm256_vm0, %v905_v46 }
 0x334   : > { %v663_v51 = vpop.f32.mrf.mxu1 }
 0x335   : > { %688 = vst.msk [vmem:[%s1278_s24 + $0x68] sm:$0xff] %vm256_vm0, %v663_v51 }
 0x336 PF: > { %s14_s14 = sadd.s32 1, %s1024_s14   ;;  %s1325_s12 = smov %s1020_s13 }
 0x337   : > { %p11_p5 = scmp.ge.s32.totalorder %s14_s14, 4   ;;  %s1326_s13 = smov %s1328_s0 }
 0x339   :  { %13 = sbr.rel (!%p11_p5) target bundleno = 2 (0x2), region = 62 }

</bundles_post_ra>
